<compile_context>
chip_gen: v6e
topology: v6e:2x2x1
jax: 0.10.0
libtpu: 0.0.40
codegen_flags: <defaults>
</compile_context>

<pallas_src>
import functools

import jax
import jax.numpy as jnp
from jax.experimental import pallas as pl
from jax.experimental.pallas import tpu as pltpu

_LANE = 128      # vreg lane width
_SUBLANE = 8     # vreg sublane count (f32)


def _round_up(n: int, m: int) -> int:
    return ((n + m - 1) // m) * m


def _elm_kernel(x_ref, w_in_ref, b_hid_ref, w_out_ref, b_out_ref, o_ref, *,
                activation: str):
    # Cast the streaming x tile to the MXU input dtype in-register (bf16 fast
    # path); weights were cast once at prepare time.
    x = x_ref[...]
    if x.dtype != w_in_ref.dtype:
        x = x.astype(w_in_ref.dtype)

    # Hidden layer: (bm, D_in) @ (D_in, H) on the MXU with f32 accumulation.
    h = jnp.dot(x, w_in_ref[...], preferred_element_type=jnp.float32)

    # Epilogue stays in f32 (v5e VPU/EUP have no bf16 ALU): bias + activation.
    h = h + b_hid_ref[...]
    if activation == "relu":
        h = jnp.maximum(h, 0.0)
    elif activation == "tanh":
        h = jnp.tanh(h)
    elif activation == "sigmoid":
        h = jax.nn.sigmoid(h)
    else:
        raise ValueError("ERROR: Unsupported Activation Function")

    # Output layer: (bm, H) @ (H, d_out_padded) on the MXU, then keep only the
    # true d_out lanes so the HBM store is unpadded (6 lanes, masked vst).
    out = jnp.dot(h.astype(w_out_ref.dtype), w_out_ref[...],
                  preferred_element_type=jnp.float32)
    d_out = o_ref.shape[-1]
    o_ref[...] = (out[:, :d_out] + b_out_ref[...]).astype(o_ref.dtype)


def prepare_elm_params(w_in, b_hidden, w_out, b_out, *, compute_dtype=None):
    """One-time weight preparation (hoisted out of the per-call path).

    w_in:     (D_in, H)   fixed random input weights (torch layout).
    b_hidden: (H,)        fixed random hidden bias ("output_bias" in torch).
    w_out:    (D_out, H)  nn.Linear weight (torch layout).
    b_out:    (D_out,)    nn.Linear bias.
    compute_dtype: optional MXU-input dtype (e.g. jnp.bfloat16).
    """
    d_in, hidden = w_in.shape
    d_out = w_out.shape[0]
    cd = jnp.dtype(compute_dtype) if compute_dtype is not None else jnp.dtype(w_in.dtype)

    d_out_p = _round_up(d_out, _LANE)          # 128-lane pad lives only in VMEM
    w_in_c = w_in.astype(cd)
    w_out_t = jnp.transpose(w_out).astype(cd)  # (H, D_out)
    w_out_p = jnp.zeros((hidden, d_out_p), cd).at[:, :d_out].set(w_out_t)
    b_hid_row = b_hidden.astype(jnp.float32).reshape(1, hidden)
    b_out_row = b_out.astype(jnp.float32).reshape(1, d_out)
    return w_in_c, b_hid_row, w_out_p, b_out_row


@functools.partial(jax.jit,
                   static_argnames=("block_m", "min_blocks", "activation"))
def elm_iod_forward(x, w_in_c, b_hid_row, w_out_p, b_out_row, *,
                    block_m: int = 4096, min_blocks: int = 1,
                    activation: str = "relu"):
    """Fused ELM_IOD forward.

    x: (B, D_in).  The remaining args come from prepare_elm_params().
    min_blocks: set >=2 on v7x so the batch tiles shard across both TCs.
    """
    B, d_in = x.shape
    d_in_w, hidden = w_in_c.shape
    assert d_in == d_in_w
    _, d_out_p = w_out_p.shape
    d_out = b_out_row.shape[-1]
    out_dtype = x.dtype

    # Batch tile: as large as comfortable, clamped to the (sublane-rounded)
    # batch; optionally capped so the grid has >= min_blocks steps (v7x).
    bm = min(block_m, _round_up(B, _SUBLANE))
    if min_blocks > 1:
        bm = min(bm, _round_up(pl.cdiv(B, min_blocks), _SUBLANE))
    bm = max(_SUBLANE, _round_up(bm, _SUBLANE))

    # No host-side padding of x: Pallas masks the partial tail block.  Safe
    # because rows are independent and tail writes are discarded.
    grid = (pl.cdiv(B, bm),)

    flops = 2 * B * (d_in * hidden + hidden * d_out)
    transcendentals = 0 if activation == "relu" else B * hidden
    bytes_accessed = (
        x.dtype.itemsize * B * d_in
        + w_in_c.dtype.itemsize * d_in * hidden
        + w_out_p.dtype.itemsize * hidden * d_out_p
        + b_hid_row.dtype.itemsize * hidden
        + b_out_row.dtype.itemsize * d_out
        + jnp.dtype(out_dtype).itemsize * B * d_out
    )

    return pl.pallas_call(
        functools.partial(_elm_kernel, activation=activation),
        out_shape=jax.ShapeDtypeStruct((B, d_out), out_dtype),
        grid_spec=pl.GridSpec(
            grid=grid,
            in_specs=[
                pl.BlockSpec((bm, d_in), lambda i: (i, 0)),         # x tile
                pl.BlockSpec((d_in, hidden), lambda i: (0, 0)),     # W_in (resident)
                pl.BlockSpec((1, hidden), lambda i: (0, 0)),        # hidden bias
                pl.BlockSpec((hidden, d_out_p), lambda i: (0, 0)),  # W_out^T (VMEM-padded)
                pl.BlockSpec((1, d_out), lambda i: (0, 0)),         # output bias (unpadded)
            ],
            out_specs=pl.BlockSpec((bm, d_out), lambda i: (i, 0)),  # unpadded HBM output
        ),
        compiler_params=pltpu.CompilerParams(
            dimension_semantics=("parallel",),   # shards batch tiles across v7x TCs
        ),
        cost_estimate=pl.CostEstimate(
            flops=flops, transcendentals=transcendentals,
            bytes_accessed=bytes_accessed),
    )(x, w_in_c, b_hid_row, w_out_p, b_out_row)


def elm_iod_reference(x, w_in, b_hidden, w_out, b_out, activation="relu"):
    h = x @ w_in + b_hidden
    if activation == "relu":
        h = jnp.maximum(h, 0.0)
    elif activation == "tanh":
        h = jnp.tanh(h)
    else:
        h = jax.nn.sigmoid(h)
    return h @ w_out.T + b_out


if __name__ == "__main__":
    # Shapes consistent with the module: input_size=8 (right-ascension
    # measurements), hidden=32, output=6 (poincare elements).
    input_size, hidden_size, output_size = 8, 32, 6

    key = jax.random.PRNGKey(0)
    k_x, k_win, k_bhid, k_wout, k_bout = jax.random.split(key, 5)

    # Deterministic parameter init mirroring torch.randn / nn.Linear shapes.
    w_in = jax.random.normal(k_win, (input_size, hidden_size), dtype=jnp.float32)
    b_hidden = jax.random.normal(k_bhid, (hidden_size,), dtype=jnp.float32)
    w_out = jax.random.normal(k_wout, (output_size, hidden_size), dtype=jnp.float32) * 0.1
    b_out = jax.random.normal(k_bout, (output_size,), dtype=jnp.float32) * 0.1

    # One-time parameter prep (padding/casts hoisted out of the forward path).
    params_f32 = prepare_elm_params(w_in, b_hidden, w_out, b_out)
    params_bf16 = prepare_elm_params(w_in, b_hidden, w_out, b_out,
                                     compute_dtype=jnp.bfloat16)

    # Case 1: tiny batch -> single-step grid, tile clamped to the batch.
    x_small = jax.random.normal(k_x, (8, input_size), dtype=jnp.float32)
    out_small = jax.block_until_ready(elm_iod_forward(x_small, *params_f32))
    ref_small = elm_iod_reference(x_small, w_in, b_hidden, w_out, b_out)
    assert out_small.shape == (8, output_size)
    assert jnp.allclose(out_small, ref_small, atol=1e-5, rtol=1e-5), "f32 small mismatch"

    # Case 2: ragged batch with a multi-step grid (partial tail block masked).
    x_big = jax.random.normal(k_x, (300, input_size), dtype=jnp.float32)
    out_big = jax.block_until_ready(
        elm_iod_forward(x_big, *params_f32, block_m=128))
    ref_big = elm_iod_reference(x_big, w_in, b_hidden, w_out, b_out)
    assert out_big.shape == (300, output_size)
    assert jnp.allclose(out_big, ref_big, atol=1e-5, rtol=1e-5), "f32 tiled mismatch"

    # Case 3: min_blocks=2 (v7x two-TC sharding path) matches the reference.
    out_two = jax.block_until_ready(
        elm_iod_forward(x_big, *params_f32, min_blocks=2))
    assert jnp.allclose(out_two, ref_big, atol=1e-5, rtol=1e-5), "min_blocks mismatch"

    # Case 4: bf16 MXU-input fast path (f32 accumulation) vs reference,
    # loose tolerances appropriate for bf16 inputs.
    out_bf16 = jax.block_until_ready(
        elm_iod_forward(x_big, *params_bf16, block_m=128))
    assert out_bf16.shape == (300, output_size)
    assert jnp.allclose(out_bf16, ref_big, atol=2e-1, rtol=5e-2), "bf16 mismatch"

    print("KERNEL_OK")
</pallas_src>

<mosaic_0001>
module attributes {stable_mosaic.version = 11 : i64} {
  func.func @_elm_kernel(%arg0: i32, %arg1: memref<8x8xf32, #tpu.memory_space<vmem>>, %arg2: memref<8x32xf32, #tpu.memory_space<vmem>>, %arg3: memref<1x32xf32, #tpu.memory_space<vmem>>, %arg4: memref<32x128xf32, #tpu.memory_space<vmem>>, %arg5: memref<1x6xf32, #tpu.memory_space<vmem>>, %arg6: memref<8x6xf32, #tpu.memory_space<vmem>>) attributes {dimension_semantics = [#tpu.dimension_semantics<parallel>], iteration_bounds = array<i64: 1>, scalar_prefetch = 0 : i64, scratch_operands = 0 : i64, tpu.core_type = #tpu.core_type<tc>, window_params = [{transform_indices = @transform_0, window_bounds = array<i64: 8, 8>}, {pipeline_mode = #tpu.pipeline_mode<synchronous>, transform_indices = @transform_1, window_bounds = array<i64: 8, 32>}, {pipeline_mode = #tpu.pipeline_mode<synchronous>, transform_indices = @transform_2, window_bounds = array<i64: 1, 32>}, {pipeline_mode = #tpu.pipeline_mode<synchronous>, transform_indices = @transform_3, window_bounds = array<i64: 32, 128>}, {pipeline_mode = #tpu.pipeline_mode<synchronous>, transform_indices = @transform_4, window_bounds = array<i64: 1, 6>}, {transform_indices = @transform_5, window_bounds = array<i64: 8, 6>}]} {
    %c0 = arith.constant 0 : index
    %c0_0 = arith.constant 0 : index
    %0 = vector.load %arg1[%c0, %c0_0] : memref<8x8xf32, #tpu.memory_space<vmem>>, vector<8x8xf32>
    %c0_1 = arith.constant 0 : index
    %c0_2 = arith.constant 0 : index
    %1 = vector.load %arg2[%c0_1, %c0_2] : memref<8x32xf32, #tpu.memory_space<vmem>>, vector<8x32xf32>
    %cst = arith.constant dense<0.000000e+00> : vector<8x32xf32>
    %2 = tpu.matmul %0, %1, %cst {dimension_numbers = #tpu.dot_dimension_numbers<[1], [0], [0], [1], [0, 0, 1, 1], [], []>} : vector<8x8xf32>, vector<8x32xf32>, vector<8x32xf32> -> vector<8x32xf32>
    %c0_3 = arith.constant 0 : index
    %c0_4 = arith.constant 0 : index
    %3 = vector.load %arg3[%c0_3, %c0_4] : memref<1x32xf32, #tpu.memory_space<vmem>>, vector<1x32xf32>
    %4 = vector.broadcast %3 : vector<1x32xf32> to vector<8x32xf32>
    %5 = arith.addf %2, %4 : vector<8x32xf32>
    %cst_5 = arith.constant 0.000000e+00 : f32
    %6 = vector.broadcast %cst_5 : f32 to vector<8x32xf32>
    %7 = arith.maximumf %5, %6 : vector<8x32xf32>
    %c0_6 = arith.constant 0 : index
    %c0_7 = arith.constant 0 : index
    %8 = vector.load %arg4[%c0_6, %c0_7] : memref<32x128xf32, #tpu.memory_space<vmem>>, vector<32x128xf32>
    %cst_8 = arith.constant dense<0.000000e+00> : vector<8x128xf32>
    %9 = tpu.matmul %7, %8, %cst_8 {dimension_numbers = #tpu.dot_dimension_numbers<[1], [0], [0], [1], [0, 0, 1, 1], [], []>} : vector<8x32xf32>, vector<32x128xf32>, vector<8x128xf32> -> vector<8x128xf32>
    %10 = vector.extract_strided_slice %9 {offsets = [0, 0], sizes = [8, 6], strides = [1, 1]} : vector<8x128xf32> to vector<8x6xf32>
    %c0_9 = arith.constant 0 : index
    %c0_10 = arith.constant 0 : index
    %11 = vector.load %arg5[%c0_9, %c0_10] : memref<1x6xf32, #tpu.memory_space<vmem>>, vector<1x6xf32>
    %12 = vector.broadcast %11 : vector<1x6xf32> to vector<8x6xf32>
    %13 = arith.addf %10, %12 : vector<8x6xf32>
    %c0_11 = arith.constant 0 : index
    %c0_12 = arith.constant 0 : index
    %14 = vector.load %arg6[%c0_11, %c0_12] : memref<8x6xf32, #tpu.memory_space<vmem>>, vector<8x6xf32>
    tpu.vector_store %arg6[%c0_11, %c0_12], %13 {strides = array<i32>} : memref<8x6xf32, #tpu.memory_space<vmem>>, vector<8x6xf32>,
    return
  }
  func.func @transform_0(%arg0: i32) -> (i32, i32) {
    %c0_i32 = arith.constant 0 : i32
    %c0_i32_0 = arith.constant 0 : i32
    return %arg0, %c0_i32 : i32, i32
  }
  func.func @transform_1(%arg0: i32) -> (i32, i32) {
    %c0_i32 = arith.constant 0 : i32
    %c0_i32_0 = arith.constant 0 : i32
    %c0_i32_1 = arith.constant 0 : i32
    return %c0_i32, %c0_i32_0 : i32, i32
  }
  func.func @transform_2(%arg0: i32) -> (i32, i32) {
    %c0_i32 = arith.constant 0 : i32
    %c0_i32_0 = arith.constant 0 : i32
    %c0_i32_1 = arith.constant 0 : i32
    return %c0_i32, %c0_i32_0 : i32, i32
  }
  func.func @transform_3(%arg0: i32) -> (i32, i32) {
    %c0_i32 = arith.constant 0 : i32
    %c0_i32_0 = arith.constant 0 : i32
    %c0_i32_1 = arith.constant 0 : i32
    return %c0_i32, %c0_i32_0 : i32, i32
  }
  func.func @transform_4(%arg0: i32) -> (i32, i32) {
    %c0_i32 = arith.constant 0 : i32
    %c0_i32_0 = arith.constant 0 : i32
    %c0_i32_1 = arith.constant 0 : i32
    return %c0_i32, %c0_i32_0 : i32, i32
  }
  func.func @transform_5(%arg0: i32) -> (i32, i32) {
    %c0_i32 = arith.constant 0 : i32
    %c0_i32_0 = arith.constant 0 : i32
    return %arg0, %c0_i32 : i32, i32
  }
}

</mosaic_0001>

<bundles_post_ra>
// kernel: elm_iod_forward.1
= control target key start
LH: loop header
LB: loop body
LE: loop exit
PB: predicated region body
PF: predicated region fallthrough
CT: control target
= control target key end

     0   :  { %10 = vsyncpa [#allocation3], 0  ;;  %s423_s0 = inlined_call_operand.hbm [shape: f32[8,8], index: 0, kind: input, shape index: {}]   ;;  %s424_s1 = inlined_call_operand.hbm [shape: f32[8,32], index: 1, kind: input, shape index: {}]   ;;  %s425_s2 = inlined_call_operand.vmem [shape: f32[1,32], index: 2, kind: input, shape index: {}]   ;;  %s426_s3 = inlined_call_operand.hbm [shape: f32[32,128], index: 3, kind: input, shape index: {}]   ;;  %s427_s4 = inlined_call_operand.vmem [shape: f32[1,6], index: 4, kind: input, shape index: {}]   ;;  %s428_s5 = inlined_call_operand.hbm [shape: f32[8,6], index: 5, kind: output, shape index: {}]  }
   0x1   :  { %11 = vsyncpa [#allocation6], 0 }
   0x2   :  { %12 = vsyncpa [#allocation4], 0  ;;  %s367_s18 = smov [#allocation5]   ;;  %s368_s20 = smov [#allocation2]  }
   0x3   :  { %s29_s19 = sshll.u32 %s367_s18, 4  ;;  %s19_s21 = sshll.u32 %s368_s20, 4  ;;  %s30_s19 = int_to_ptr.vmem [resolvable:$true] %s29_s19  ;;  %s20_s21 = int_to_ptr.vmem [resolvable:$true] %s19_s21 }
   0x4   :  { %s289_s22 = scalar_lea.vmem %s30_s19, 128  ;;  %p294_p1 = scmp.lt.s32.totalorder %s30_s19, %s30_s19 }
   0x5   :  { %p290_p0 = scmp.ne.s32.totalorder %s30_s19, %s289_s22  ;;  %p295_p2 = scmp.lt.s32.totalorder %s289_s22, %s289_s22 }
   0x7   :  { %p296_p3 = por %p295_p2, %p294_p1 }
   0x9   :  { %p297_p4 = pnand %p296_p3, %p290_p0 }
   0xb   :  { %300 = shalt.err (!%p297_p4)
}
   0xc   :  { %32 = dma.hbm_to_vmem [thread:$0]  %s424_s1, 128, %s30_s19, [#allocation6]  }
   0xd   :  { %s309_s25 = scalar_lea.vmem %s20_s21, 128  ;;  %p314_p6 = scmp.lt.s32.totalorder %s20_s21, %s20_s21 }
   0xe   :  { %p310_p5 = scmp.ne.s32.totalorder %s20_s21, %s309_s25  ;;  %p315_p7 = scmp.lt.s32.totalorder %s309_s25, %s309_s25 }
  0x10   :  { %p316_p8 = por %p315_p7, %p314_p6 }
  0x12   :  { %p317_p9 = pnand %p316_p8, %p310_p5 }
  0x14   :  { %320 = shalt.err (!%p317_p9)
}
  0x15   :  { %22 = dma.hbm_to_vmem [thread:$0]  %s423_s0, 128, %s20_s21, [#allocation3]  }
  0x16   :  { %s369_s28 = smov [#allocation7]  }
  0x17   :  { %s40_s29 = sshll.u32 %s369_s28, 4  ;;  %s41_s29 = int_to_ptr.vmem [resolvable:$true] %s40_s29 }
  0x18   :  { %s329_s30 = scalar_lea.vmem %s41_s29, 512  ;;  %p334_p11 = scmp.lt.s32.totalorder %s41_s29, %s41_s29 }
  0x19   :  { %p330_p10 = scmp.ne.s32.totalorder %s41_s29, %s329_s30  ;;  %p335_p12 = scmp.lt.s32.totalorder %s329_s30, %s329_s30 }
  0x1b   :  { %p336_p13 = por %p335_p12, %p334_p11 }
  0x1d   :  { %p337_p0 = pnand %p336_p13, %p330_p10 }
  0x1f   :  { %340 = shalt.err (!%p337_p0)
}
  0x20   :  { %s370_s1 = smov 128   ;;  %s371_s6 = smov 8  }
  0x21   :  { %46 = dma.hbm_to_vmem [thread:$0]  %s426_s3, 512, %s41_s29, [#allocation6], %s370_s1, %s370_s1, %s371_s6  }
  0x22   :  { %361 = dma.done.wait [#allocation3], 128  }
  0x23   :  { %362 = vsyncadd [#allocation3], 4294967168 }
  0x24   :  { %363 = dma.done.wait [#allocation6], 640  }
  0x25   :  { %364 = vsyncadd [#allocation6], 4294966656  ;;  %v372_v0 = vmov 0.0   ;;  %vm373_vm0 = vmmov 0   ;;  %vm67_vm1 = vcmask 64512   ;;  %v59_v1 = vld [vmem:[#allocation5] sm:$0xff] }
  0x26   :  { %257 = vmatprep.subr.mxu0 %v372_v0  ;;  %259 = vmatprep.mubr.msk.f32.mxu0 %vm373_vm0, %v372_v0  ;;  %v58_v2 = vld [vmem:[#allocation2] sm:$0xff]  ;;  %v145_v3 = vld [vmem:[#allocation7 + $0x18] sm:$0xff]  ;;  %v143_v5 = vld [vmem:[#allocation7 + $0x8] sm:$0xff]  ;;  %vm146_vm2 = vcmask 261120   ;;  %s374_s11 = smov [#allocation8]   ;;  %vm228_vm3 = vcmask 48128  }
  0x27   :  { %262 = vmatprep.subr.mxu1 %v372_v0  ;;  %270 = vmatprep.mubr.msk.f32.mxu1 %vm373_vm0, %v372_v0  ;;  %v144_v4 = vld [vmem:[#allocation7 + $0x10] sm:$0xff]  ;;  %v142_v6 = vld [vmem:[#allocation7] sm:$0xff]  ;;  %s236_s12 = sshll.u32 %s374_s11, 4  ;;  %s237_s12 = int_to_ptr.vmem [resolvable:$true] %s236_s12 }
  0x28   :  { %258 = vmatpush3.msra.mxu0 %v59_v1  ;;  %263 = vmatpush3.msra.mxu1 %v145_v3  ;;  %v246_v7 = vld [vmem:[%s425_s2] ss:$0 sm:$0xff]  ;;  %s341_s13 = scalar_lea.vmem %s237_s12, 128  ;;  %p346_p2 = scmp.lt.s32.totalorder %s237_s12, %s237_s12 }
  0x29   :  { %260 = vmatmul.mubr.msk.f32.vlgmr.msra.gmra.mxu0 %vm67_vm1, %v58_v2  ;;  %264 = vmatprep.subr.mxu1 %v372_v0  ;;  %v249_v12 = vld [vmem:[%s427_s4] ss:$0 sm:$0xff]  ;;  %p342_p1 = scmp.ne.s32.totalorder %s237_s12, %s341_s13  ;;  %p347_p3 = scmp.lt.s32.totalorder %s341_s13, %s341_s13 }
  0x2a   :  { %265 = vmatpush3.msra.mxu1 %v144_v4 }
  0x2b   :  { %266 = vmatprep.subr.mxu1 %v372_v0  ;;  %p348_p4 = por %p347_p3, %p346_p2 }
  0x2c   :  { %267 = vmatpush3.msra.mxu1 %v143_v5 }
  0x2d   :  { %268 = vmatprep.subr.mxu1 %v372_v0  ;;  %p349_p5 = pnand %p348_p4, %p342_p1 }
  0x2e   :  { %269 = vmatpush3.msra.mxu1 %v142_v6 }
  0xe9   :  { %v137_v8 = vpop.f32.mrf.mxu0 }
  0xea   :  { %v138_v9 = vadd.f32 %v246_v7, %v137_v8 }
  0xeb   :  { %v261_v10 = vpop.f32.mrf.mxu0 }
  0xec   :  { %v141_v11 = vmax.f32 %v138_v9, 0.0 }
  0xee   :  { %271 = vmatmul.mubr.msk.f32.vlgmr.msra.gmra.mxu1 %vm146_vm2, %v141_v11 }
 0x1ae   :  { %v216_v13 = vpop.f32.mrf.mxu1 }
 0x1af   :  { %v227_v14 = vadd.f32 %v249_v12, %v216_v13 }
 0x1b0   :  { %v272_v15 = vpop.f32.mrf.mxu1 }
 0x1b1   :  { %229 = vst.msk [vmem:[#allocation8] sm:$0xff] %vm228_vm3, %v227_v14 }
 0x1b2   :  { %352 = shalt.err (!%p349_p5)
}
 0x1b3   :  { %239 = dma.vmem_to_hbm [thread:$0]  %s237_s12, 128, %s428_s5, [#allocation4]  }
 0x1b4   :  { %365 = dma.done.wait [#allocation4], 128  }
 0x1b5   :  { %366 = vsyncadd [#allocation4], 4294967168 }
 0x1b6   :  { %243 = vsyncpa [#allocation3], 1 }
 0x1b7   :  { %244 = vsyncpa [#allocation6], 1 }
 0x1b8   :  { %245 = vsyncpa [#allocation4], 1 }

</bundles_post_ra>
